<compile_context>
chip_gen: v7x
topology: tpu7x:2x2x1
jax: 0.10.0
libtpu: 0.0.40
codegen_flags: <defaults>
</compile_context>

<pallas_src>
import functools

import jax
import jax.numpy as jnp
from jax.experimental import pallas as pl
from jax.experimental.pallas import tpu as pltpu

EPS = 1e-5
_LANES = 128  # lane width of one vreg row; packed params are (8, _LANES)

# Row layout of the packed (8, 128) parameter array.
_ROW_B1, _ROW_G1, _ROW_BE1 = 0, 1, 2
_ROW_B2, _ROW_G2, _ROW_BE2 = 3, 4, 5
_ROW_B3 = 6


def _actor_kernel(x_ref, w1_ref, w2_ref, w3_ref, vec_ref, out_ref, *, fc1, fc2):
    x = x_ref[...]                          # (B, state) f32
    inv_b = 1.0 / x.shape[0]

    # ---- fc1 + relu -------------------------------------------------------
    h1 = jnp.dot(x, w1_ref[...], preferred_element_type=jnp.float32)
    h1 = h1 + vec_ref[_ROW_B1:_ROW_B1 + 1, 0:fc1]
    h1 = jnp.maximum(h1, 0.0)

    # ---- bn1: single-pass batch stats + folded affine (one FMA on BxH) ----
    s1 = jnp.sum(h1, axis=0, keepdims=True)
    s2 = jnp.sum(h1 * h1, axis=0, keepdims=True)
    mean1 = s1 * inv_b
    var1 = s2 * inv_b - mean1 * mean1
    scale1 = vec_ref[_ROW_G1:_ROW_G1 + 1, 0:fc1] * jax.lax.rsqrt(var1 + EPS)
    shift1 = vec_ref[_ROW_BE1:_ROW_BE1 + 1, 0:fc1] - mean1 * scale1
    h1 = h1 * scale1 + shift1

    # ---- fc2 + relu -------------------------------------------------------
    h2 = jnp.dot(h1, w2_ref[...], preferred_element_type=jnp.float32)
    h2 = h2 + vec_ref[_ROW_B2:_ROW_B2 + 1, 0:fc2]
    h2 = jnp.maximum(h2, 0.0)

    # ---- bn2 ---------------------------------------------------------------
    t1 = jnp.sum(h2, axis=0, keepdims=True)
    t2 = jnp.sum(h2 * h2, axis=0, keepdims=True)
    mean2 = t1 * inv_b
    var2 = t2 * inv_b - mean2 * mean2
    scale2 = vec_ref[_ROW_G2:_ROW_G2 + 1, 0:fc2] * jax.lax.rsqrt(var2 + EPS)
    shift2 = vec_ref[_ROW_BE2:_ROW_BE2 + 1, 0:fc2] - mean2 * scale2
    h2 = h2 * scale2 + shift2

    # ---- fc3 + tanh (128-lane padded output -> unmasked store) ------------
    out = jnp.dot(h2, w3_ref[...], preferred_element_type=jnp.float32)
    out = jnp.tanh(out + vec_ref[_ROW_B3:_ROW_B3 + 1, :])
    out_ref[...] = out.astype(out_ref.dtype)


def pack_actor_params(params):
    """Build the packed kernel operands ONCE (outside the per-step call).

    Packs the 7 small vectors into one (8, 128) array (one DMA) and zero-pads
    W3 to 128 output columns (lane-dense output store). Padded columns only
    contribute tanh(0)=0 entries that the wrapper slices away.
    """
    fc1 = params["w1"].shape[1]
    fc2 = params["w2"].shape[1]
    action = params["w3"].shape[1]
    assert fc1 <= _LANES and fc2 <= _LANES and action <= _LANES

    vec = jnp.zeros((8, _LANES), jnp.float32)
    vec = vec.at[_ROW_B1, :fc1].set(params["b1"].reshape(-1))
    vec = vec.at[_ROW_G1, :fc1].set(params["gamma1"].reshape(-1))
    vec = vec.at[_ROW_BE1, :fc1].set(params["beta1"].reshape(-1))
    vec = vec.at[_ROW_B2, :fc2].set(params["b2"].reshape(-1))
    vec = vec.at[_ROW_G2, :fc2].set(params["gamma2"].reshape(-1))
    vec = vec.at[_ROW_BE2, :fc2].set(params["beta2"].reshape(-1))
    vec = vec.at[_ROW_B3, :action].set(params["b3"].reshape(-1))

    w3_pad = jnp.zeros((fc2, _LANES), jnp.float32)
    w3_pad = w3_pad.at[:, :action].set(params["w3"])

    return {
        "w1": params["w1"],
        "w2": params["w2"],
        "w3_pad": w3_pad,
        "vec": vec,
        "fc1": fc1,
        "fc2": fc2,
        "action_size": action,
    }


def actor_forward(x, packed):
    """x: [B, state_size] f32 (or [state_size]). packed: from pack_actor_params."""
    if x.ndim == 1:                      # mirror PyTorch `state.dim() == 1` path
        x = x[None, :]
    B = x.shape[0]
    if B < 2:
        # PyTorch BatchNorm1d in training mode rejects batch size 1; a batch of
        # one makes the batch variance exactly 0 and the output degenerate.
        raise ValueError("Actor forward (training-mode BatchNorm) needs batch >= 2.")

    kernel = functools.partial(_actor_kernel, fc1=packed["fc1"], fc2=packed["fc2"])
    args = (x, packed["w1"], packed["w2"], packed["w3_pad"], packed["vec"])
    out_pad = pl.pallas_call(
        kernel,
        out_shape=jax.ShapeDtypeStruct((B, _LANES), jnp.float32),
        in_specs=[pl.BlockSpec(memory_space=pltpu.VMEM) for _ in args],
        out_specs=pl.BlockSpec(memory_space=pltpu.VMEM),
    )(*args)
    return out_pad[:, :packed["action_size"]]


def init_actor_params(key, state_size, action_size, fc1_units, fc2_units):
    """Deterministic init mirroring Actor.__init__ / reset_parameters.

    hidden_init uses weight.size()[0] == out_features, so lim = 1/sqrt(out).
    Biases keep PyTorch Linear default init U(-1/sqrt(in), 1/sqrt(in)).
    Weights are stored [in, out] (transposed vs. PyTorch)."""
    ks = jax.random.split(key, 6)

    def u(k, shape, lim):
        return jax.random.uniform(k, shape, jnp.float32, -lim, lim)

    lim1 = 1.0 / jnp.sqrt(jnp.float32(fc1_units))
    lim2 = 1.0 / jnp.sqrt(jnp.float32(fc2_units))
    return {
        "w1": u(ks[0], (state_size, fc1_units), lim1),
        "b1": u(ks[1], (1, fc1_units), 1.0 / jnp.sqrt(jnp.float32(state_size))),
        "gamma1": jnp.ones((1, fc1_units), jnp.float32),
        "beta1": jnp.zeros((1, fc1_units), jnp.float32),
        "w2": u(ks[2], (fc1_units, fc2_units), lim2),
        "b2": u(ks[3], (1, fc2_units), 1.0 / jnp.sqrt(jnp.float32(fc1_units))),
        "gamma2": jnp.ones((1, fc2_units), jnp.float32),
        "beta2": jnp.zeros((1, fc2_units), jnp.float32),
        "w3": u(ks[4], (fc2_units, action_size), 0.003),
        "b3": u(ks[5], (1, action_size), 1.0 / jnp.sqrt(jnp.float32(fc2_units))),
    }


def _reference_forward(x, p):
    """Pure-JAX reference (two-pass stats, unfolded BN) for sanity checking."""
    h1 = jnp.maximum(x @ p["w1"] + p["b1"], 0.0)
    m, v = jnp.mean(h1, 0, keepdims=True), jnp.var(h1, 0, keepdims=True)
    h1 = (h1 - m) * jax.lax.rsqrt(v + EPS) * p["gamma1"] + p["beta1"]
    h2 = jnp.maximum(h1 @ p["w2"] + p["b2"], 0.0)
    m, v = jnp.mean(h2, 0, keepdims=True), jnp.var(h2, 0, keepdims=True)
    h2 = (h2 - m) * jax.lax.rsqrt(v + EPS) * p["gamma2"] + p["beta2"]
    return jnp.tanh(h2 @ p["w3"] + p["b3"])


if __name__ == "__main__":
    # Small Tennis-like shapes: state=24, action=2, hidden 64/64, batch=8.
    STATE, ACTION, FC1, FC2, BATCH = 24, 2, 64, 64, 8

    key = jax.random.PRNGKey(0)
    k_params, k_x = jax.random.split(key)
    params = init_actor_params(k_params, STATE, ACTION, FC1, FC2)
    packed = pack_actor_params(params)            # one-time packing/padding
    x = jax.random.normal(k_x, (BATCH, STATE), jnp.float32)

    out = actor_forward(x, packed)
    out = jax.block_until_ready(out)

    ref = _reference_forward(x, params)
    assert out.shape == (BATCH, ACTION)
    assert jnp.allclose(out, ref, atol=1e-5, rtol=1e-5)

    print("KERNEL_OK")
</pallas_src>

<mosaic_0001>
module attributes {stable_mosaic.version = 11 : i64} {
  func.func @_actor_kernel(%arg0: memref<8x24xf32, #tpu.memory_space<vmem>>, %arg1: memref<24x64xf32, #tpu.memory_space<vmem>>, %arg2: memref<64x64xf32, #tpu.memory_space<vmem>>, %arg3: memref<64x128xf32, #tpu.memory_space<vmem>>, %arg4: memref<8x128xf32, #tpu.memory_space<vmem>>, %arg5: memref<8x128xf32, #tpu.memory_space<vmem>>) attributes {dimension_semantics = [], scalar_prefetch = 0 : i64, scratch_operands = 0 : i64, tpu.core_type = #tpu.core_type<tc>} {
    %c0 = arith.constant 0 : index
    %c0_0 = arith.constant 0 : index
    %0 = vector.load %arg0[%c0, %c0_0] : memref<8x24xf32, #tpu.memory_space<vmem>>, vector<8x24xf32>
    %c0_1 = arith.constant 0 : index
    %c0_2 = arith.constant 0 : index
    %1 = vector.load %arg1[%c0_1, %c0_2] : memref<24x64xf32, #tpu.memory_space<vmem>>, vector<24x64xf32>
    %cst = arith.constant dense<0.000000e+00> : vector<8x64xf32>
    %2 = tpu.matmul %0, %1, %cst {dimension_numbers = #tpu.dot_dimension_numbers<[1], [0], [0], [1], [0, 0, 1, 1], [], []>} : vector<8x24xf32>, vector<24x64xf32>, vector<8x64xf32> -> vector<8x64xf32>
    %c0_3 = arith.constant 0 : index
    %c0_4 = arith.constant 0 : index
    %3 = vector.load %arg4[%c0_3, %c0_4] : memref<8x128xf32, #tpu.memory_space<vmem>>, vector<1x64xf32>
    %4 = vector.broadcast %3 : vector<1x64xf32> to vector<8x64xf32>
    %5 = arith.addf %2, %4 : vector<8x64xf32>
    %cst_5 = arith.constant 0.000000e+00 : f32
    %6 = vector.broadcast %cst_5 : f32 to vector<8x64xf32>
    %7 = arith.maximumf %5, %6 : vector<8x64xf32>
    %cst_6 = arith.constant dense<0.000000e+00> : vector<64xf32>
    %8 = vector.multi_reduction <add>, %7, %cst_6 [0] : vector<8x64xf32> to vector<64xf32>
    %9 = vector.shape_cast %8 : vector<64xf32> to vector<1x64xf32>
    %10 = arith.mulf %7, %7 : vector<8x64xf32>
    %cst_7 = arith.constant dense<0.000000e+00> : vector<64xf32>
    %11 = vector.multi_reduction <add>, %10, %cst_7 [0] : vector<8x64xf32> to vector<64xf32>
    %12 = vector.shape_cast %11 : vector<64xf32> to vector<1x64xf32>
    %cst_8 = arith.constant 1.250000e-01 : f32
    %13 = vector.broadcast %cst_8 : f32 to vector<1x64xf32>
    %14 = arith.mulf %9, %13 : vector<1x64xf32>
    %cst_9 = arith.constant 1.250000e-01 : f32
    %15 = vector.broadcast %cst_9 : f32 to vector<1x64xf32>
    %16 = arith.mulf %12, %15 : vector<1x64xf32>
    %17 = arith.mulf %14, %14 : vector<1x64xf32>
    %18 = arith.subf %16, %17 : vector<1x64xf32>
    %c1 = arith.constant 1 : index
    %c0_10 = arith.constant 0 : index
    %19 = vector.load %arg4[%c1, %c0_10] : memref<8x128xf32, #tpu.memory_space<vmem>>, vector<1x64xf32>
    %cst_11 = arith.constant 9.99999974E-6 : f32
    %20 = vector.broadcast %cst_11 : f32 to vector<1x64xf32>
    %21 = arith.addf %18, %20 : vector<1x64xf32>
    %22 = math.rsqrt %21 : vector<1x64xf32>
    %23 = arith.mulf %19, %22 : vector<1x64xf32>
    %c2 = arith.constant 2 : index
    %c0_12 = arith.constant 0 : index
    %24 = vector.load %arg4[%c2, %c0_12] : memref<8x128xf32, #tpu.memory_space<vmem>>, vector<1x64xf32>
    %25 = arith.mulf %14, %23 : vector<1x64xf32>
    %26 = arith.subf %24, %25 : vector<1x64xf32>
    %27 = vector.broadcast %23 : vector<1x64xf32> to vector<8x64xf32>
    %28 = arith.mulf %7, %27 : vector<8x64xf32>
    %29 = vector.broadcast %26 : vector<1x64xf32> to vector<8x64xf32>
    %30 = arith.addf %28, %29 : vector<8x64xf32>
    %c0_13 = arith.constant 0 : index
    %c0_14 = arith.constant 0 : index
    %31 = vector.load %arg2[%c0_13, %c0_14] : memref<64x64xf32, #tpu.memory_space<vmem>>, vector<64x64xf32>
    %cst_15 = arith.constant dense<0.000000e+00> : vector<8x64xf32>
    %32 = tpu.matmul %30, %31, %cst_15 {dimension_numbers = #tpu.dot_dimension_numbers<[1], [0], [0], [1], [0, 0, 1, 1], [], []>} : vector<8x64xf32>, vector<64x64xf32>, vector<8x64xf32> -> vector<8x64xf32>
    %c3 = arith.constant 3 : index
    %c0_16 = arith.constant 0 : index
    %33 = vector.load %arg4[%c3, %c0_16] : memref<8x128xf32, #tpu.memory_space<vmem>>, vector<1x64xf32>
    %34 = vector.broadcast %33 : vector<1x64xf32> to vector<8x64xf32>
    %35 = arith.addf %32, %34 : vector<8x64xf32>
    %cst_17 = arith.constant 0.000000e+00 : f32
    %36 = vector.broadcast %cst_17 : f32 to vector<8x64xf32>
    %37 = arith.maximumf %35, %36 : vector<8x64xf32>
    %cst_18 = arith.constant dense<0.000000e+00> : vector<64xf32>
    %38 = vector.multi_reduction <add>, %37, %cst_18 [0] : vector<8x64xf32> to vector<64xf32>
    %39 = vector.shape_cast %38 : vector<64xf32> to vector<1x64xf32>
    %40 = arith.mulf %37, %37 : vector<8x64xf32>
    %cst_19 = arith.constant dense<0.000000e+00> : vector<64xf32>
    %41 = vector.multi_reduction <add>, %40, %cst_19 [0] : vector<8x64xf32> to vector<64xf32>
    %42 = vector.shape_cast %41 : vector<64xf32> to vector<1x64xf32>
    %cst_20 = arith.constant 1.250000e-01 : f32
    %43 = vector.broadcast %cst_20 : f32 to vector<1x64xf32>
    %44 = arith.mulf %39, %43 : vector<1x64xf32>
    %cst_21 = arith.constant 1.250000e-01 : f32
    %45 = vector.broadcast %cst_21 : f32 to vector<1x64xf32>
    %46 = arith.mulf %42, %45 : vector<1x64xf32>
    %47 = arith.mulf %44, %44 : vector<1x64xf32>
    %48 = arith.subf %46, %47 : vector<1x64xf32>
    %c4 = arith.constant 4 : index
    %c0_22 = arith.constant 0 : index
    %49 = vector.load %arg4[%c4, %c0_22] : memref<8x128xf32, #tpu.memory_space<vmem>>, vector<1x64xf32>
    %cst_23 = arith.constant 9.99999974E-6 : f32
    %50 = vector.broadcast %cst_23 : f32 to vector<1x64xf32>
    %51 = arith.addf %48, %50 : vector<1x64xf32>
    %52 = math.rsqrt %51 : vector<1x64xf32>
    %53 = arith.mulf %49, %52 : vector<1x64xf32>
    %c5 = arith.constant 5 : index
    %c0_24 = arith.constant 0 : index
    %54 = vector.load %arg4[%c5, %c0_24] : memref<8x128xf32, #tpu.memory_space<vmem>>, vector<1x64xf32>
    %55 = arith.mulf %44, %53 : vector<1x64xf32>
    %56 = arith.subf %54, %55 : vector<1x64xf32>
    %57 = vector.broadcast %53 : vector<1x64xf32> to vector<8x64xf32>
    %58 = arith.mulf %37, %57 : vector<8x64xf32>
    %59 = vector.broadcast %56 : vector<1x64xf32> to vector<8x64xf32>
    %60 = arith.addf %58, %59 : vector<8x64xf32>
    %c0_25 = arith.constant 0 : index
    %c0_26 = arith.constant 0 : index
    %61 = vector.load %arg3[%c0_25, %c0_26] : memref<64x128xf32, #tpu.memory_space<vmem>>, vector<64x128xf32>
    %cst_27 = arith.constant dense<0.000000e+00> : vector<8x128xf32>
    %62 = tpu.matmul %60, %61, %cst_27 {dimension_numbers = #tpu.dot_dimension_numbers<[1], [0], [0], [1], [0, 0, 1, 1], [], []>} : vector<8x64xf32>, vector<64x128xf32>, vector<8x128xf32> -> vector<8x128xf32>
    %c6 = arith.constant 6 : index
    %c0_28 = arith.constant 0 : index
    %63 = vector.load %arg4[%c6, %c0_28] : memref<8x128xf32, #tpu.memory_space<vmem>>, vector<1x128xf32>
    %64 = vector.broadcast %63 : vector<1x128xf32> to vector<8x128xf32>
    %65 = arith.addf %62, %64 : vector<8x128xf32>
    %66 = math.tanh %65 : vector<8x128xf32>
    %c0_29 = arith.constant 0 : index
    %c0_30 = arith.constant 0 : index
    %67 = vector.load %arg5[%c0_29, %c0_30] : memref<8x128xf32, #tpu.memory_space<vmem>>, vector<8x128xf32>
    tpu.vector_store %arg5[%c0_29, %c0_30], %66 {strides = array<i32>} : memref<8x128xf32, #tpu.memory_space<vmem>>, vector<8x128xf32>,
    return
  }
}

</mosaic_0001>

<bundles_post_ra>
// kernel: tpu_custom_call.1
= control target key start
LH: loop header
LB: loop body
LE: loop exit
PB: predicated region body
PF: predicated region fallthrough
CT: control target
= control target key end

     0   :  { %10 = vsyncpa [#allocation3], 0  ;;  %s813_s0 = inlined_call_operand.hbm [shape: f32[8,24], index: 0, kind: input, shape index: {}]   ;;  %s814_s1 = inlined_call_operand.hbm [shape: f32[24,64], index: 1, kind: input, shape index: {}]   ;;  %s815_s2 = inlined_call_operand.hbm [shape: f32[64,64], index: 2, kind: input, shape index: {}]   ;;  %s816_s3 = inlined_call_operand.hbm [shape: f32[64,128], index: 3, kind: input, shape index: {}]   ;;  %s817_s4 = inlined_call_operand.vmem [shape: f32[8,128], index: 4, kind: input, shape index: {}]   ;;  %s818_s5 = inlined_call_operand.hbm [shape: f32[8,128], index: 5, kind: output, shape index: {}]  }
   0x1   :  { %11 = vsyncpa [#allocation6], 0 }
   0x2   :  { %12 = vsyncpa [#allocation9], 0 }
   0x3   :  { %13 = vsyncpa [#allocation4], 0  ;;  %s659_s18 = smov [#allocation5]   ;;  %s541_s22 = scalar_lea.hbm %s814_s1, 384 }
   0x4   :  { %s29_s19 = sshll.u32 %s659_s18, 4  ;;  %p542_p0 = scmp.ne.s32.totalorder %s814_s1, %s541_s22  ;;  %s30_s19 = int_to_ptr.vmem [resolvable:$true] %s29_s19 }
   0x5   :  { %p545_p1 = scmp.lt.u32.totalorder %s541_s22, %s814_s1 }
   0x7   :  { %p547_p2 = pnand %p545_p1, %p542_p0 }
   0x9   :  { %550 = shalt.err (!%p547_p2)
}
   0xa   :  { %s551_s27 = scalar_lea.vmem %s30_s19, 384  ;;  %p556_p4 = scmp.lt.s32.totalorder %s30_s19, %s30_s19 }
   0xb   :  { %p552_p3 = scmp.ne.s32.totalorder %s30_s19, %s551_s27  ;;  %p557_p5 = scmp.lt.s32.totalorder %s551_s27, %s551_s27 }
   0xd   :  { %p558_p6 = por %p557_p5, %p556_p4 }
   0xf   :  { %p559_p7 = pnand %p558_p6, %p552_p3 }
  0x11   :  { %562 = shalt.err (!%p559_p7)
}
  0x12   :  { %s660_s28 = smov 128   ;;  %s661_s29 = smov 8  }
  0x13   :  { %35 = dma.hbm_to_vmem [thread:$0]  %s814_s1, 384, %s30_s19, [#allocation6], %s660_s28, %s660_s28, %s661_s29  }
  0x14   :  { %s662_s7 = smov [#allocation2]   ;;  %s663_s9 = smov [#allocation7]  }
  0x15   :  { %s20_s8 = sshll.u32 %s662_s7, 4  ;;  %s41_s10 = sshll.u32 %s663_s9, 4  ;;  %s21_s8 = int_to_ptr.vmem [resolvable:$true] %s20_s8  ;;  %s42_s10 = int_to_ptr.vmem [resolvable:$true] %s41_s10 }
  0x16   :  { %s563_s13 = scalar_lea.hbm %s813_s0, 128 }
  0x17   :  { %p564_p8 = scmp.ne.s32.totalorder %s813_s0, %s563_s13  ;;  %p567_p9 = scmp.lt.u32.totalorder %s563_s13, %s813_s0 }
  0x19   :  { %p569_p10 = pnand %p567_p9, %p564_p8 }
  0x1b   :  { %572 = shalt.err (!%p569_p10)
}
  0x1c   :  { %s573_s1 = scalar_lea.vmem %s21_s8, 128  ;;  %p578_p12 = scmp.lt.s32.totalorder %s21_s8, %s21_s8 }
  0x1d   :  { %p574_p11 = scmp.ne.s32.totalorder %s21_s8, %s573_s1  ;;  %p579_p13 = scmp.lt.s32.totalorder %s573_s1, %s573_s1 }
  0x1f   :  { %p580_p0 = por %p579_p13, %p578_p12 }
  0x21   :  { %p581_p1 = pnand %p580_p0, %p574_p11 }
  0x23   :  { %584 = shalt.err (!%p581_p1)
}
  0x24   :  { %23 = dma.hbm_to_vmem [thread:$0]  %s813_s0, 128, %s21_s8, [#allocation3]  }
  0x25   :  { %s585_s22 = scalar_lea.hbm %s815_s2, 1024 }
  0x26   :  { %p586_p2 = scmp.ne.s32.totalorder %s815_s2, %s585_s22  ;;  %p589_p3 = scmp.lt.u32.totalorder %s585_s22, %s815_s2 }
  0x28   :  { %p591_p4 = pnand %p589_p3, %p586_p2 }
  0x2a   :  { %594 = shalt.err (!%p591_p4)
}
  0x2b   :  { %s595_s27 = scalar_lea.vmem %s42_s10, 1024  ;;  %p600_p6 = scmp.lt.s32.totalorder %s42_s10, %s42_s10 }
  0x2c   :  { %p596_p5 = scmp.ne.s32.totalorder %s42_s10, %s595_s27  ;;  %p601_p7 = scmp.lt.s32.totalorder %s595_s27, %s595_s27 }
  0x2e   :  { %p602_p8 = por %p601_p7, %p600_p6 }
  0x30   :  { %p603_p9 = pnand %p602_p8, %p596_p5 }
  0x32   :  { %606 = shalt.err (!%p603_p9)
}
  0x33   :  { %47 = dma.hbm_to_vmem [thread:$0]  %s815_s2, 1024, %s42_s10, [#allocation6], %s660_s28, %s660_s28, %s661_s29  }
  0x34   :  { %s664_s6 = smov [#allocation8]   ;;  %s607_s11 = scalar_lea.hbm %s816_s3, 1024 }
  0x35   :  { %s53_s7 = sshll.u32 %s664_s6, 4  ;;  %p608_p10 = scmp.ne.s32.totalorder %s816_s3, %s607_s11  ;;  %s54_s7 = int_to_ptr.vmem [resolvable:$true] %s53_s7 }
  0x36   :  { %p611_p11 = scmp.lt.u32.totalorder %s607_s11, %s816_s3 }
  0x38   :  { %p613_p12 = pnand %p611_p11, %p608_p10 }
  0x3a   :  { %616 = shalt.err (!%p613_p12)
}
  0x3b   :  { %s617_s16 = scalar_lea.vmem %s54_s7, 1024  ;;  %p622_p0 = scmp.lt.s32.totalorder %s54_s7, %s54_s7 }
  0x3c   :  { %p618_p13 = scmp.ne.s32.totalorder %s54_s7, %s617_s16  ;;  %p623_p1 = scmp.lt.s32.totalorder %s617_s16, %s617_s16 }
  0x3e   :  { %p624_p2 = por %p623_p1, %p622_p0 }
  0x40   :  { %p625_p3 = pnand %p624_p2, %p618_p13 }
  0x42   :  { %628 = shalt.err (!%p625_p3)
}
  0x43   :  { %59 = dma.hbm_to_vmem [thread:$0]  %s816_s3, 1024, %s54_s7, [#allocation9], %s660_s28, %s660_s28, %s661_s29  }
  0x44   :  { %651 = dma.done.wait [#allocation3], 128  }
  0x45   :  { %652 = vsyncadd [#allocation3], 4294967168 }
  0x46   :  { %653 = dma.done.wait [#allocation6], 1408  }
  0x47   :  { %654 = vsyncadd [#allocation6], 4294965888 }
  0x48   :  { %655 = dma.done.wait [#allocation9], 1024  }
  0x49   :  { %656 = vsyncadd [#allocation9], 4294966272  ;;  %v665_v0 = vmov 0.0|0.0   ;;  %vm666_vm0 = vmmov 0   ;;  %v667_v1 = vmov 0.0   ;;  %v75_v2 = vld [vmem:[#allocation5] sm:$0xff]  ;;  %v185_v44 = vlaneseq }
  0x4a   :  { %498 = vmatprep.subr.bf16.mxu0 %v665_v0  ;;  %457 = vmatprep.mubr.msk.f32.mxu0 %vm666_vm0, %v667_v1  ;;  %v76_v3 = vld [vmem:[#allocation5 + $0x8] sm:$0xff]  ;;  %v77_v5 = vld [vmem:[#allocation5 + $0x10] sm:$0xff]  ;;  %v74_v6 = vld [vmem:[#allocation2] sm:$0xff]  ;;  %vm83_vm1 = vcmask 195584   ;;  %vm158_vm2 = vcmask 523264   ;;  %s668_s27 = smov [#allocation10]  }
  0x4b   :  { %501 = vmatprep.subr.bf16.mxu1 %v665_v0  ;;  %476 = vmatprep.mubr.msk.f32.mxu1 %vm666_vm0, %v667_v1  ;;  %v499_v4 = vpack.c.bf16 %v76_v3, %v75_v2  ;;  %v195_v7 = vld [vmem:[#allocation7] sm:$0xff]  ;;  %v196_v8 = vld [vmem:[#allocation7 + $0x8] sm:$0xff]  ;;  %v197_v10 = vld [vmem:[#allocation7 + $0x10] sm:$0xff]  ;;  %v186_v45 = vshrl.u32 %v185_v44, 7  ;;  %s412_s0 = sshll.u32 %s668_s27, 4  ;;  %s413_s0 = int_to_ptr.vmem [resolvable:$true] %s412_s0 }
  0x4c   :  { %v502_v9 = vpack.c.bf16 %v196_v8, %v195_v7  ;;  %v198_v11 = vld [vmem:[#allocation7 + $0x18] sm:$0xff]  ;;  %v199_v13 = vld [vmem:[#allocation7 + $0x20] sm:$0xff]  ;;  %v200_v14 = vld [vmem:[#allocation7 + $0x28] sm:$0xff]  ;;  %s629_s30 = scalar_lea.vmem %s413_s0, 128  ;;  %p634_p5 = scmp.lt.s32.totalorder %s413_s0, %s413_s0 }
  0x4d   :  { %500 = vmatpush3.bf16.msra.mxu0 %v499_v4  ;;  %v505_v12 = vpack.c.bf16 %v198_v11, %v197_v10  ;;  %v508_v15 = vpack.c.bf16 %v200_v14, %v199_v13  ;;  %v201_v16 = vld [vmem:[#allocation7 + $0x30] sm:$0xff]  ;;  %v202_v17 = vld [vmem:[#allocation7 + $0x38] sm:$0xff]  ;;  %v423_v19 = vld [vmem:[%s817_s4] ss:$0 sm:$0xff]  ;;  %v773_v47 = vsub.s32 0, %v186_v45  ;;  %p630_p4 = scmp.ne.s32.totalorder %s413_s0, %s629_s30  ;;  %p635_p6 = scmp.lt.s32.totalorder %s629_s30, %s629_s30 }
  0x4e   :  { %455 = vmatprep.subr.mxu0 %v667_v1  ;;  %503 = vmatpush3.bf16.msra.mxu1 %v502_v9  ;;  %v511_v18 = vpack.c.bf16 %v202_v17, %v201_v16  ;;  %v178_v46 = vld [vmem:[%s817_s4 + $0x1] sm:$0x1]  ;;  %v182_v50 = vld [vmem:[%s817_s4 + $0x2] sm:$0x1]  ;;  %v319_v58 = vld [vmem:[#allocation8 + $0x8] sm:$0xff] }
  0x4f   :  { %504 = vmatprep.subr.bf16.mxu1 %v665_v0  ;;  %v318_v57 = vld [vmem:[#allocation8] sm:$0xff]  ;;  %v320_v60 = vld [vmem:[#allocation8 + $0x10] sm:$0xff]  ;;  %v321_v61 = vld [vmem:[#allocation8 + $0x18] sm:$0xff]  ;;  %p636_p7 = por %p635_p6, %p634_p5 }
  0x50   :  { %v514_v59 = vpack.c.bf16 %v319_v58, %v318_v57  ;;  %v517_v62 = vpack.c.bf16 %v321_v61, %v320_v60  ;;  %v322_v63 = vld [vmem:[#allocation8 + $0x20] sm:$0xff]  ;;  %v324_v3 = vld [vmem:[#allocation8 + $0x30] sm:$0xff]  ;;  %v325_v4 = vld [vmem:[#allocation8 + $0x38] sm:$0xff] }
  0x51   :  { %456 = vmatpush3.msra.mxu0 %v77_v5  ;;  %v523_v5 = vpack.c.bf16 %v325_v4, %v324_v3  ;;  %p637_p8 = pnand %p636_p7, %p630_p4 }
  0x52   :  { %458 = vmatmul.mubr.msk.f32.vlgmr.msra.gmra.mrb[0].mxu0 %vm83_vm1, %v74_v6  ;;  %513 = vmatprep.subr.bf16.mxu0 %v665_v0  ;;  %v425_v6 = vld [vmem:[%s817_s4 + $0x3] ss:$0 sm:$0xff] }
  0x53   :  { %495 = vmatprep.mubr.msk.f32.mxu0 %vm666_vm0, %v667_v1  ;;  %506 = vmatpush3.bf16.msra.mxu1 %v505_v12  ;;  %v323_v1 = vld [vmem:[#allocation8 + $0x28] sm:$0xff] }
  0x54   :  { %507 = vmatprep.subr.bf16.mxu1 %v665_v0  ;;  %515 = vmatpush3.bf16.msra.mxu0 %v514_v59  ;;  %v520_v2 = vpack.c.bf16 %v323_v1, %v322_v63 }
  0x55   :  { %516 = vmatprep.subr.bf16.mxu0 %v665_v0 }
  0x57   :  { %509 = vmatpush3.bf16.msra.mxu1 %v508_v15 }
  0x58   :  { %510 = vmatprep.subr.bf16.mxu1 %v665_v0  ;;  %518 = vmatpush3.bf16.msra.mxu0 %v517_v62 }
  0x59   :  { %519 = vmatprep.subr.bf16.mxu0 %v665_v0 }
  0x5b   :  { %512 = vmatpush3.bf16.msra.mxu1 %v511_v18 }
  0x5c   :  { %521 = vmatpush3.bf16.msra.mxu0 %v520_v2 }
  0x5d   :  { %522 = vmatprep.subr.bf16.mxu0 %v665_v0 }
  0x60   :  { %524 = vmatpush3.bf16.msra.mxu0 %v523_v5 }
 0x125   :  { %v153_v20 = vpop.f32.mrb[0].mxu0 }
 0x126   :  { %v154_v21 = vadd.f32 %v423_v19, %v153_v20  ;;  %v459_v22 = vpop.f32.mrb[1].mxu0 }
 0x128   :  { %v157_v23 = vmax.f32 %v154_v21, 0.0 }
 0x12a   :  { %v159_v24 = vsel %vm158_vm2, %v157_v23, 0.0  ;;  %v166_v25 = vmul.f32 %v157_v23, %v157_v23 }
 0x12b   :  { %v160_v26 = vrot.slane %v159_v24, 4 }
 0x12c   :  { %v167_v27 = vsel %vm158_vm2, %v166_v25, 0.0 }
 0x12d   :  { %v161_v28 = vadd.f32 %v160_v26, %v159_v24  ;;  %v168_v29 = vrot.slane %v167_v27, 4 }
 0x12f   :  { %v162_v30 = vrot.slane %v161_v28, 2  ;;  %v169_v31 = vadd.f32 %v168_v29, %v167_v27 }
 0x131   :  { %v163_v32 = vadd.f32 %v162_v30, %v161_v28  ;;  %v170_v33 = vrot.slane %v169_v31, 2  ;;  %v301_v30 = vld [vmem:[%s817_s4 + $0x4] sm:$0x1] }
 0x133   :  { %v164_v34 = vrot.slane %v163_v32, 1  ;;  %v171_v35 = vadd.f32 %v170_v33, %v169_v31  ;;  %v305_v33 = vld [vmem:[%s817_s4 + $0x5] sm:$0x1] }
 0x135   :  { %v165_v36 = vadd.f32 %v164_v34, %v163_v32  ;;  %v172_v37 = vrot.slane %v171_v35, 1 }
 0x137   :  { %v173_v38 = vadd.f32 %v172_v37, %v171_v35  ;;  %v174_v39 = vmul.f32 0.125, %v165_v36 }
 0x139   :  { %v175_v40 = vmul.f32 0.125, %v173_v38  ;;  %v176_v41 = vmul.f32 %v174_v39, %v174_v39 }
 0x13b   :  { %v177_v42 = vsub.f32 %v175_v40, %v176_v41  ;;  %v427_v40 = vld [vmem:[%s817_s4 + $0x6] ss:$0 sm:$0xff] }
 0x13d   :  { %v179_v43 = vadd.f32 1e-05, %v177_v42 }
 0x13f   :  { %535 = vrsqrt.f32 %v179_v43 }
 0x149   :  { %v536_v48 = vpop.eup %535 }
 0x14a   :  { %v181_v49 = vmul.f32 %v536_v48, %v178_v46 }
 0x14c   :  { %v183_v51 = vmul.f32 %v181_v49, %v174_v39  ;;  %v188_v52 = vrot.slane %v181_v49, %v773_v47 }
 0x14e   :  { %v184_v53 = vsub.f32 %v182_v50, %v183_v51  ;;  %v189_v54 = vmul.f32 %v188_v52, %v157_v23 }
 0x150   :  { %v193_v55 = vrot.slane %v184_v53, %v773_v47 }
 0x152   :  { %v194_v56 = vadd.f32 %v193_v55, %v189_v54 }
 0x154   :  { %477 = vmatmul.mubr.msk.f32.vlgmr.msra.gmra.mrb[0].mxu1 %vm158_vm2, %v194_v56 }
 0x227   :  { %v277_v7 = vpop.f32.mrb[0].mxu1 }
 0x228   :  { %v278_v8 = vadd.f32 %v425_v6, %v277_v7  ;;  %v478_v9 = vpop.f32.mrb[1].mxu1 }
 0x22a   :  { %v281_v10 = vmax.f32 %v278_v8, 0.0 }
 0x22c   :  { %v282_v11 = vsel %vm158_vm2, %v281_v10, 0.0  ;;  %v289_v12 = vmul.f32 %v281_v10, %v281_v10 }
 0x22d   :  { %v283_v13 = vrot.slane %v282_v11, 4 }
 0x22e   :  { %v290_v14 = vsel %vm158_vm2, %v289_v12, 0.0 }
 0x22f   :  { %v284_v15 = vadd.f32 %v283_v13, %v282_v11  ;;  %v291_v0 = vrot.slane %v290_v14, 4 }
 0x231   :  { %v285_v16 = vrot.slane %v284_v15, 2  ;;  %v292_v17 = vadd.f32 %v291_v0, %v290_v14 }
 0x233   :  { %v286_v18 = vadd.f32 %v285_v16, %v284_v15  ;;  %v293_v19 = vrot.slane %v292_v17, 2 }
 0x235   :  { %v287_v20 = vrot.slane %v286_v18, 1  ;;  %v294_v21 = vadd.f32 %v293_v19, %v292_v17 }
 0x237   :  { %v288_v22 = vadd.f32 %v287_v20, %v286_v18  ;;  %v295_v23 = vrot.slane %v294_v21, 1 }
 0x239   :  { %v296_v24 = vadd.f32 %v295_v23, %v294_v21  ;;  %v297_v25 = vmul.f32 0.125, %v288_v22 }
 0x23b   :  { %v298_v26 = vmul.f32 0.125, %v296_v24  ;;  %v299_v27 = vmul.f32 %v297_v25, %v297_v25 }
 0x23d   :  { %v300_v28 = vsub.f32 %v298_v26, %v299_v27 }
 0x23f   :  { %v302_v29 = vadd.f32 1e-05, %v300_v28 }
 0x241   :  { %537 = vrsqrt.f32 %v302_v29 }
 0x24b   :  { %v538_v31 = vpop.eup %537 }
 0x24c   :  { %v304_v32 = vmul.f32 %v538_v31, %v301_v30 }
 0x24e   :  { %v306_v34 = vmul.f32 %v304_v32, %v297_v25  ;;  %v311_v35 = vrot.slane %v304_v32, %v773_v47 }
 0x250   :  { %v307_v36 = vsub.f32 %v305_v33, %v306_v34  ;;  %v312_v37 = vmul.f32 %v311_v35, %v281_v10 }
 0x252   :  { %v316_v38 = vrot.slane %v307_v36, %v773_v47 }
 0x254   :  { %v317_v39 = vadd.f32 %v316_v38, %v312_v37 }
 0x256   :  { %496 = vmatmul.mubr.msk.f32.vlgmr.msra.gmra.mrb[2].mxu0 %vm158_vm2, %v317_v39 }
 0x329   :  { %v400_v41 = vpop.f32.mrb[2].mxu0 }
 0x32a   :  { %v401_v42 = vadd.f32 %v427_v40, %v400_v41  ;;  %v497_v43 = vpop.f32.mrb[3].mxu0 }
 0x32c   :  { %539 = vtanh.f32 %v401_v42 }
 0x336   :  { %v540_v44 = vpop.eup %539 }
 0x337   :  { %405 = vst [vmem:[#allocation10] sm:$0xff] %v540_v44 }
 0x338   :  { %640 = shalt.err (!%p637_p8)
}
 0x339   :  { %s641_s4 = scalar_lea.hbm %s818_s5, 128 }
 0x33a   :  { %p642_p9 = scmp.ne.s32.totalorder %s818_s5, %s641_s4  ;;  %p645_p10 = scmp.lt.u32.totalorder %s641_s4, %s818_s5 }
 0x33c   :  { %p647_p11 = pnand %p645_p10, %p642_p9 }
 0x33e   :  { %650 = shalt.err (!%p647_p11)
}
 0x33f   :  { %415 = dma.vmem_to_hbm [thread:$0]  %s413_s0, 128, %s818_s5, [#allocation4]  }
 0x340   :  { %657 = dma.done.wait [#allocation4], 128  }
 0x341   :  { %658 = vsyncadd [#allocation4], 4294967168 }
 0x342   :  { %419 = vsyncpa [#allocation3], 1 }
 0x343   :  { %420 = vsyncpa [#allocation6], 1 }
 0x344   :  { %421 = vsyncpa [#allocation9], 1 }
 0x345   :  { %422 = vsyncpa [#allocation4], 1 }

</bundles_post_ra>
